<compile_context>
chip_gen: v7x
topology: tpu7x:2x2x1
jax: 0.10.0
libtpu: 0.0.40
codegen_flags: <defaults>
</compile_context>

<pallas_src>
import math
import jax
import jax.numpy as jnp
from jax import lax
from jax.experimental import pallas as pl
from jax.experimental.pallas import tpu as pltpu


def make_lstm_kernel(num_layers, H, T, Bp, K_max):
    G = 4 * H
    unroll = T if T <= 8 else 8  # modest unroll at realistic T; full unroll for toy T

    def kernel(x_ref, w_ih_ref, w_hh_ref, b_ref, w_fc_ref, b_fc_ref, out_ref,
               hseq_ref, proj_ref):
        # x_ref    : (T*Bp, K_max)  time-major, zero-padded layer-0 input (resident)
        # w_ih_ref : (K_max, G)     this layer's input weights (rows zero-padded)
        # w_hh_ref : (H, G)         this layer's recurrent weights
        # b_ref    : (1, G)         b_ih + b_hh, gate column order [i | f | o | g]
        # w_fc_ref : (H, OUT_PAD),  b_fc_ref: (1, OUT_PAD)
        # out_ref  : (Bp, OUT_PAD)
        # hseq_ref : (T*Bp, K_max)  persistent scratch: this layer's input sequence,
        #                           overwritten in place with its hidden sequence
        #                           (which becomes the next layer's input).
        # proj_ref : (T*Bp, G)      scratch: full-sequence input projection for this layer.
        layer = pl.program_id(0)

        # Stage the layer-0 input into the persistent sequence scratch once.
        @pl.when(layer == 0)
        def _():
            hseq_ref[...] = x_ref[...]

        # One big MXU matmul per layer (off the recurrent critical path), bias folded in.
        proj_ref[...] = (
            jnp.dot(hseq_ref[...], w_ih_ref[...], preferred_element_type=jnp.float32)
            + b_ref[...])

        w_hh = w_hh_ref[...]  # hoisted out of the time loop

        def step(t, carry):
            h, c = carry
            row = pl.multiple_of(t * Bp, Bp)  # Bp is a multiple of 8 -> aligned slices
            g = proj_ref[pl.ds(row, Bp), :] + jnp.dot(
                h, w_hh, preferred_element_type=jnp.float32)           # (Bp, 4H)
            # Gate order [i | f | o | g]: sigmoid on the first 3H lanes, tanh on the last H.
            sig = jax.nn.sigmoid(g[:, 0:3 * H])
            g_g = jnp.tanh(g[:, 3 * H:4 * H])
            i_g = sig[:, 0:H]
            f_g = sig[:, H:2 * H]
            o_g = sig[:, 2 * H:3 * H]
            c = f_g * c + i_g * g_g
            h = o_g * jnp.tanh(c)
            # Hidden sequence -> scratch (next layer's input); bounds live ranges.
            if K_max == H:
                hseq_ref[pl.ds(row, Bp), :] = h
            else:
                hseq_ref[pl.ds(row, Bp), pl.ds(0, H)] = h
            return h, c

        h0 = jnp.zeros((Bp, H), jnp.float32)
        c0 = jnp.zeros((Bp, H), jnp.float32)
        h_last, _ = lax.fori_loop(0, T, step, (h0, c0), unroll=unroll)

        # FC head on the last timestep of the last layer (lane-dense 128-wide block).
        @pl.when(layer == num_layers - 1)
        def _():
            out_ref[...] = (
                jnp.dot(h_last, w_fc_ref[...], preferred_element_type=jnp.float32)
                + b_fc_ref[...])

    return kernel


def lstm_model_forward(x, params):
    """x: (B, T, IN) float32 -> (B, OUT) float32. Matches LSTMModel.forward."""
    B, T, IN = x.shape
    L = len(params["w_ih"])
    H = params["w_hh"][0].shape[1]
    G = 4 * H
    OUT = params["w_fc"].shape[0]
    OUT_PAD = ((OUT + 127) // 128) * 128
    Bp = ((B + 7) // 8) * 8                    # sublane-aligned batch
    K_max = ((max(IN, H) + 7) // 8) * 8        # shared input width across layers

    def reorder(w_cols):   # gate columns [i|f|g|o] (PyTorch) -> [i|f|o|g]
        return jnp.concatenate(
            [w_cols[..., :2 * H], w_cols[..., 3 * H:], w_cols[..., 2 * H:3 * H]], axis=-1)

    # Stacked per-layer weights: grid=(L,) BlockSpecs double-buffer the next layer's
    # weights behind the current layer's recurrent loop. Rows beyond each layer's true
    # input width are zero, so stale columns in the hseq scratch contribute nothing.
    w_ih_all = jnp.zeros((L, K_max, G), jnp.float32)
    w_hh_all = jnp.zeros((L, H, G), jnp.float32)
    b_all = jnp.zeros((L, 1, G), jnp.float32)
    for l in range(L):
        in_l = IN if l == 0 else H
        w_ih_all = w_ih_all.at[l, :in_l, :].set(
            reorder(params["w_ih"][l].T.astype(jnp.float32)))
        w_hh_all = w_hh_all.at[l, :, :].set(
            reorder(params["w_hh"][l].T.astype(jnp.float32)))
        b_all = b_all.at[l, 0, :].set(
            reorder((params["b_ih"][l] + params["b_hh"][l]).astype(jnp.float32)))

    # Time-major, batch- and width-padded layer-0 input: (T*Bp, K_max).
    x_tm = jnp.transpose(x, (1, 0, 2)).astype(jnp.float32)        # (T, B, IN)
    x_pad = jnp.zeros((T, Bp, K_max), jnp.float32).at[:, :B, :IN].set(x_tm)
    x_flat = x_pad.reshape(T * Bp, K_max)

    # FC head, padded to a lane-dense 128-wide output block.
    w_fc_pad = jnp.zeros((H, OUT_PAD), jnp.float32).at[:, :OUT].set(
        params["w_fc"].T.astype(jnp.float32))
    b_fc_pad = jnp.zeros((1, OUT_PAD), jnp.float32).at[0, :OUT].set(
        params["b_fc"].astype(jnp.float32))

    kernel = make_lstm_kernel(L, H, T, Bp, K_max)
    out_pad = pl.pallas_call(
        kernel,
        out_shape=jax.ShapeDtypeStruct((Bp, OUT_PAD), jnp.float32),
        grid_spec=pltpu.PrefetchScalarGridSpec(
            num_scalar_prefetch=0,
            grid=(L,),
            in_specs=[
                pl.BlockSpec((T * Bp, K_max), lambda l: (0, 0)),      # x      (resident)
                pl.BlockSpec((None, K_max, G), lambda l: (l, 0, 0)),  # W_ih[l] (dbl-buffered)
                pl.BlockSpec((None, H, G), lambda l: (l, 0, 0)),      # W_hh[l] (dbl-buffered)
                pl.BlockSpec((None, 1, G), lambda l: (l, 0, 0)),      # bias[l]
                pl.BlockSpec((H, OUT_PAD), lambda l: (0, 0)),         # W_fc   (resident)
                pl.BlockSpec((1, OUT_PAD), lambda l: (0, 0)),         # b_fc   (resident)
            ],
            out_specs=pl.BlockSpec((Bp, OUT_PAD), lambda l: (0, 0)),
            scratch_shapes=[
                pltpu.VMEM((T * Bp, K_max), jnp.float32),   # hidden-sequence scratch
                pltpu.VMEM((T * Bp, G), jnp.float32),       # input-projection scratch
            ],
        ),
        compiler_params=pltpu.CompilerParams(
            dimension_semantics=("arbitrary",)),   # layers are serially dependent
    )(x_flat, w_ih_all, w_hh_all, b_all, w_fc_pad, b_fc_pad)
    return out_pad[:B, :OUT]


def reference_forward(x, params):
    """Pure-JAX reference of the PyTorch LSTMModel forward (PyTorch gate order i,f,g,o)."""
    B, T, _ = x.shape
    num_layers = len(params["w_ih"])
    H = params["w_hh"][0].shape[1]
    layer_in = x
    for l in range(num_layers):
        h = jnp.zeros((B, H), jnp.float32)
        c = jnp.zeros((B, H), jnp.float32)
        outs = []
        for t in range(T):
            g = (layer_in[:, t, :] @ params["w_ih"][l].T + params["b_ih"][l]
                 + h @ params["w_hh"][l].T + params["b_hh"][l])
            i = jax.nn.sigmoid(g[:, :H])
            f = jax.nn.sigmoid(g[:, H:2 * H])
            gg = jnp.tanh(g[:, 2 * H:3 * H])
            o = jax.nn.sigmoid(g[:, 3 * H:])
            c = f * c + i * gg
            h = o * jnp.tanh(c)
            outs.append(h)
        layer_in = jnp.stack(outs, axis=1)
    return layer_in[:, -1, :] @ params["w_fc"].T + params["b_fc"]


def init_params(key, input_size, hidden_size, num_layers, output_size):
    # Deterministic synthetic init, mirroring PyTorch's U(-1/sqrt(H), 1/sqrt(H)).
    k = 1.0 / math.sqrt(hidden_size)
    params = {"w_ih": [], "w_hh": [], "b_ih": [], "b_hh": []}
    for l in range(num_layers):
        in_l = input_size if l == 0 else hidden_size
        key, k1, k2, k3, k4 = jax.random.split(key, 5)
        params["w_ih"].append(jax.random.uniform(k1, (4 * hidden_size, in_l), jnp.float32, -k, k))
        params["w_hh"].append(jax.random.uniform(k2, (4 * hidden_size, hidden_size), jnp.float32, -k, k))
        params["b_ih"].append(jax.random.uniform(k3, (4 * hidden_size,), jnp.float32, -k, k))
        params["b_hh"].append(jax.random.uniform(k4, (4 * hidden_size,), jnp.float32, -k, k))
    key, k1, k2 = jax.random.split(key, 3)
    params["w_fc"] = jax.random.uniform(k1, (output_size, hidden_size), jnp.float32, -k, k)
    params["b_fc"] = jax.random.uniform(k2, (output_size,), jnp.float32, -k, k)
    return key, params


if __name__ == "__main__":
    B, T = 2, 8
    input_size, hidden_size, num_layers, output_size = 4, 32, 2, 3

    key = jax.random.PRNGKey(0)
    key, params = init_params(key, input_size, hidden_size, num_layers, output_size)
    key, kx = jax.random.split(key)
    x = jax.random.normal(kx, (B, T, input_size), jnp.float32)

    out = lstm_model_forward(x, params)
    out = jax.block_until_ready(out)

    ref = reference_forward(x, params)
    assert out.shape == (B, output_size)
    assert jnp.allclose(out, ref, rtol=1e-4, atol=1e-4), (out, ref)

    print("KERNEL_OK")
</pallas_src>

<mosaic_0001>
module attributes {stable_mosaic.version = 11 : i64} {
  func.func @kernel(%arg0: i32, %arg1: memref<64x32xf32, #tpu.memory_space<vmem>>, %arg2: memref<1x32x128xf32, #tpu.memory_space<vmem>>, %arg3: memref<1x32x128xf32, #tpu.memory_space<vmem>>, %arg4: memref<1x1x128xf32, #tpu.memory_space<vmem>>, %arg5: memref<32x128xf32, #tpu.memory_space<vmem>>, %arg6: memref<1x128xf32, #tpu.memory_space<vmem>>, %arg7: memref<8x128xf32, #tpu.memory_space<vmem>>, %arg8: memref<64x32xf32, #tpu.memory_space<vmem>>, %arg9: memref<64x128xf32, #tpu.memory_space<vmem>>) attributes {dimension_semantics = [#tpu.dimension_semantics<arbitrary>], iteration_bounds = array<i64: 2>, scalar_prefetch = 0 : i64, scratch_operands = 2 : i64, tpu.core_type = #tpu.core_type<tc>, window_params = [{pipeline_mode = #tpu.pipeline_mode<synchronous>, transform_indices = @transform_0, window_bounds = array<i64: 64, 32>}, {transform_indices = @transform_1, window_bounds = array<i64: 1, 32, 128>}, {transform_indices = @transform_2, window_bounds = array<i64: 1, 32, 128>}, {transform_indices = @transform_3, window_bounds = array<i64: 1, 1, 128>}, {pipeline_mode = #tpu.pipeline_mode<synchronous>, transform_indices = @transform_4, window_bounds = array<i64: 32, 128>}, {pipeline_mode = #tpu.pipeline_mode<synchronous>, transform_indices = @transform_5, window_bounds = array<i64: 1, 128>}, {pipeline_mode = #tpu.pipeline_mode<synchronous>, transform_indices = @transform_6, window_bounds = array<i64: 8, 128>}]} {
    %c0_i32 = arith.constant 0 : i32
    %0 = arith.cmpi eq, %arg0, %c0_i32 : i32
    %1 = arith.extui %0 : i1 to i32
    %c0_i32_0 = arith.constant 0 : i32
    %2 = arith.cmpi ne, %1, %c0_i32_0 : i32
    scf.if %2 {
      %c0_58 = arith.constant 0 : index
      %c0_59 = arith.constant 0 : index
      %211 = vector.load %arg1[%c0_58, %c0_59] : memref<64x32xf32, #tpu.memory_space<vmem>>, vector<64x32xf32>
      %c0_60 = arith.constant 0 : index
      %c0_61 = arith.constant 0 : index
      %212 = vector.load %arg8[%c0_60, %c0_61] : memref<64x32xf32, #tpu.memory_space<vmem>>, vector<64x32xf32>
      tpu.vector_store %arg8[%c0_60, %c0_61], %211 {strides = array<i32>} : memref<64x32xf32, #tpu.memory_space<vmem>>, vector<64x32xf32>,
    } else {
    }
    %c0 = arith.constant 0 : index
    %c0_1 = arith.constant 0 : index
    %3 = vector.load %arg8[%c0, %c0_1] : memref<64x32xf32, #tpu.memory_space<vmem>>, vector<64x32xf32>
    %c0_2 = arith.constant 0 : index
    %c0_3 = arith.constant 0 : index
    %c0_4 = arith.constant 0 : index
    %4 = vector.load %arg2[%c0_2, %c0_3, %c0_4] : memref<1x32x128xf32, #tpu.memory_space<vmem>>, vector<1x32x128xf32>
    %5 = vector.shape_cast %4 : vector<1x32x128xf32> to vector<32x128xf32>
    %cst = arith.constant dense<0.000000e+00> : vector<64x128xf32>
    %6 = tpu.matmul %3, %5, %cst {dimension_numbers = #tpu.dot_dimension_numbers<[1], [0], [0], [1], [0, 0, 1, 1], [], []>} : vector<64x32xf32>, vector<32x128xf32>, vector<64x128xf32> -> vector<64x128xf32>
    %c0_5 = arith.constant 0 : index
    %c0_6 = arith.constant 0 : index
    %c0_7 = arith.constant 0 : index
    %7 = vector.load %arg4[%c0_5, %c0_6, %c0_7] : memref<1x1x128xf32, #tpu.memory_space<vmem>>, vector<1x1x128xf32>
    %8 = vector.shape_cast %7 : vector<1x1x128xf32> to vector<1x128xf32>
    %9 = vector.broadcast %8 : vector<1x128xf32> to vector<64x128xf32>
    %10 = arith.addf %6, %9 : vector<64x128xf32>
    %c0_8 = arith.constant 0 : index
    %c0_9 = arith.constant 0 : index
    %11 = vector.load %arg9[%c0_8, %c0_9] : memref<64x128xf32, #tpu.memory_space<vmem>>, vector<64x128xf32>
    tpu.vector_store %arg9[%c0_8, %c0_9], %10 {strides = array<i32>} : memref<64x128xf32, #tpu.memory_space<vmem>>, vector<64x128xf32>,
    %c0_10 = arith.constant 0 : index
    %c0_11 = arith.constant 0 : index
    %c0_12 = arith.constant 0 : index
    %12 = vector.load %arg3[%c0_10, %c0_11, %c0_12] : memref<1x32x128xf32, #tpu.memory_space<vmem>>, vector<1x32x128xf32>
    %13 = vector.shape_cast %12 : vector<1x32x128xf32> to vector<32x128xf32>
    %cst_13 = arith.constant 0.000000e+00 : f32
    %14 = vector.broadcast %cst_13 : f32 to vector<8x32xf32>
    %cst_14 = arith.constant 0.000000e+00 : f32
    %15 = vector.broadcast %cst_14 : f32 to vector<8x32xf32>
    %c0_i32_15 = arith.constant 0 : i32
    %c8_i32 = arith.constant 8 : i32
    %16 = arith.muli %c0_i32_15, %c8_i32 : i32
    %17 = tpu.assume_multiple %16, 8 : i32
    %18 = arith.index_cast %17 : i32 to index
    %c0_16 = arith.constant 0 : index
    %19 = vector.load %arg9[%18, %c0_16] : memref<64x128xf32, #tpu.memory_space<vmem>>, vector<8x128xf32>
    %cst_17 = arith.constant dense<0.000000e+00> : vector<8x128xf32>
    %20 = tpu.matmul %14, %13, %cst_17 {dimension_numbers = #tpu.dot_dimension_numbers<[1], [0], [0], [1], [0, 0, 1, 1], [], []>} : vector<8x32xf32>, vector<32x128xf32>, vector<8x128xf32> -> vector<8x128xf32>
    %21 = arith.addf %19, %20 : vector<8x128xf32>
    %22 = vector.extract_strided_slice %21 {offsets = [0, 0], sizes = [8, 96], strides = [1, 1]} : vector<8x128xf32> to vector<8x96xf32>
    %23 = arith.negf %22 : vector<8x96xf32>
    %24 = math.exp %23 : vector<8x96xf32>
    %cst_18 = arith.constant 1.000000e+00 : f32
    %25 = vector.broadcast %cst_18 : f32 to vector<8x96xf32>
    %26 = arith.addf %25, %24 : vector<8x96xf32>
    %27 = arith.divf %25, %26 : vector<8x96xf32>
    %28 = vector.extract_strided_slice %21 {offsets = [0, 96], sizes = [8, 32], strides = [1, 1]} : vector<8x128xf32> to vector<8x32xf32>
    %29 = math.tanh %28 : vector<8x32xf32>
    %30 = vector.extract_strided_slice %27 {offsets = [0, 0], sizes = [8, 32], strides = [1, 1]} : vector<8x96xf32> to vector<8x32xf32>
    %31 = vector.extract_strided_slice %27 {offsets = [0, 32], sizes = [8, 32], strides = [1, 1]} : vector<8x96xf32> to vector<8x32xf32>
    %32 = vector.extract_strided_slice %27 {offsets = [0, 64], sizes = [8, 32], strides = [1, 1]} : vector<8x96xf32> to vector<8x32xf32>
    %33 = arith.mulf %31, %15 : vector<8x32xf32>
    %34 = arith.mulf %30, %29 : vector<8x32xf32>
    %35 = arith.addf %33, %34 : vector<8x32xf32>
    %36 = math.tanh %35 : vector<8x32xf32>
    %37 = arith.mulf %32, %36 : vector<8x32xf32>
    %38 = arith.index_cast %17 : i32 to index
    %c0_19 = arith.constant 0 : index
    %39 = vector.load %arg8[%38, %c0_19] : memref<64x32xf32, #tpu.memory_space<vmem>>, vector<8x32xf32>
    tpu.vector_store %arg8[%38, %c0_19], %37 {strides = array<i32>} : memref<64x32xf32, #tpu.memory_space<vmem>>, vector<8x32xf32>,
    %c1_i32 = arith.constant 1 : i32
    %c8_i32_20 = arith.constant 8 : i32
    %40 = arith.muli %c1_i32, %c8_i32_20 : i32
    %41 = tpu.assume_multiple %40, 8 : i32
    %42 = arith.index_cast %41 : i32 to index
    %c0_21 = arith.constant 0 : index
    %43 = vector.load %arg9[%42, %c0_21] : memref<64x128xf32, #tpu.memory_space<vmem>>, vector<8x128xf32>
    %cst_22 = arith.constant dense<0.000000e+00> : vector<8x128xf32>
    %44 = tpu.matmul %37, %13, %cst_22 {dimension_numbers = #tpu.dot_dimension_numbers<[1], [0], [0], [1], [0, 0, 1, 1], [], []>} : vector<8x32xf32>, vector<32x128xf32>, vector<8x128xf32> -> vector<8x128xf32>
    %45 = arith.addf %43, %44 : vector<8x128xf32>
    %46 = vector.extract_strided_slice %45 {offsets = [0, 0], sizes = [8, 96], strides = [1, 1]} : vector<8x128xf32> to vector<8x96xf32>
    %47 = arith.negf %46 : vector<8x96xf32>
    %48 = math.exp %47 : vector<8x96xf32>
    %cst_23 = arith.constant 1.000000e+00 : f32
    %49 = vector.broadcast %cst_23 : f32 to vector<8x96xf32>
    %50 = arith.addf %49, %48 : vector<8x96xf32>
    %51 = arith.divf %49, %50 : vector<8x96xf32>
    %52 = vector.extract_strided_slice %45 {offsets = [0, 96], sizes = [8, 32], strides = [1, 1]} : vector<8x128xf32> to vector<8x32xf32>
    %53 = math.tanh %52 : vector<8x32xf32>
    %54 = vector.extract_strided_slice %51 {offsets = [0, 0], sizes = [8, 32], strides = [1, 1]} : vector<8x96xf32> to vector<8x32xf32>
    %55 = vector.extract_strided_slice %51 {offsets = [0, 32], sizes = [8, 32], strides = [1, 1]} : vector<8x96xf32> to vector<8x32xf32>
    %56 = vector.extract_strided_slice %51 {offsets = [0, 64], sizes = [8, 32], strides = [1, 1]} : vector<8x96xf32> to vector<8x32xf32>
    %57 = arith.mulf %55, %35 : vector<8x32xf32>
    %58 = arith.mulf %54, %53 : vector<8x32xf32>
    %59 = arith.addf %57, %58 : vector<8x32xf32>
    %60 = math.tanh %59 : vector<8x32xf32>
    %61 = arith.mulf %56, %60 : vector<8x32xf32>
    %62 = arith.index_cast %41 : i32 to index
    %c0_24 = arith.constant 0 : index
    %63 = vector.load %arg8[%62, %c0_24] : memref<64x32xf32, #tpu.memory_space<vmem>>, vector<8x32xf32>
    tpu.vector_store %arg8[%62, %c0_24], %61 {strides = array<i32>} : memref<64x32xf32, #tpu.memory_space<vmem>>, vector<8x32xf32>,
    %c2_i32 = arith.constant 2 : i32
    %c8_i32_25 = arith.constant 8 : i32
    %64 = arith.muli %c2_i32, %c8_i32_25 : i32
    %65 = tpu.assume_multiple %64, 8 : i32
    %66 = arith.index_cast %65 : i32 to index
    %c0_26 = arith.constant 0 : index
    %67 = vector.load %arg9[%66, %c0_26] : memref<64x128xf32, #tpu.memory_space<vmem>>, vector<8x128xf32>
    %cst_27 = arith.constant dense<0.000000e+00> : vector<8x128xf32>
    %68 = tpu.matmul %61, %13, %cst_27 {dimension_numbers = #tpu.dot_dimension_numbers<[1], [0], [0], [1], [0, 0, 1, 1], [], []>} : vector<8x32xf32>, vector<32x128xf32>, vector<8x128xf32> -> vector<8x128xf32>
    %69 = arith.addf %67, %68 : vector<8x128xf32>
    %70 = vector.extract_strided_slice %69 {offsets = [0, 0], sizes = [8, 96], strides = [1, 1]} : vector<8x128xf32> to vector<8x96xf32>
    %71 = arith.negf %70 : vector<8x96xf32>
    %72 = math.exp %71 : vector<8x96xf32>
    %cst_28 = arith.constant 1.000000e+00 : f32
    %73 = vector.broadcast %cst_28 : f32 to vector<8x96xf32>
    %74 = arith.addf %73, %72 : vector<8x96xf32>
    %75 = arith.divf %73, %74 : vector<8x96xf32>
    %76 = vector.extract_strided_slice %69 {offsets = [0, 96], sizes = [8, 32], strides = [1, 1]} : vector<8x128xf32> to vector<8x32xf32>
    %77 = math.tanh %76 : vector<8x32xf32>
    %78 = vector.extract_strided_slice %75 {offsets = [0, 0], sizes = [8, 32], strides = [1, 1]} : vector<8x96xf32> to vector<8x32xf32>
    %79 = vector.extract_strided_slice %75 {offsets = [0, 32], sizes = [8, 32], strides = [1, 1]} : vector<8x96xf32> to vector<8x32xf32>
    %80 = vector.extract_strided_slice %75 {offsets = [0, 64], sizes = [8, 32], strides = [1, 1]} : vector<8x96xf32> to vector<8x32xf32>
    %81 = arith.mulf %79, %59 : vector<8x32xf32>
    %82 = arith.mulf %78, %77 : vector<8x32xf32>
    %83 = arith.addf %81, %82 : vector<8x32xf32>
    %84 = math.tanh %83 : vector<8x32xf32>
    %85 = arith.mulf %80, %84 : vector<8x32xf32>
    %86 = arith.index_cast %65 : i32 to index
    %c0_29 = arith.constant 0 : index
    %87 = vector.load %arg8[%86, %c0_29] : memref<64x32xf32, #tpu.memory_space<vmem>>, vector<8x32xf32>
    tpu.vector_store %arg8[%86, %c0_29], %85 {strides = array<i32>} : memref<64x32xf32, #tpu.memory_space<vmem>>, vector<8x32xf32>,
    %c3_i32 = arith.constant 3 : i32
    %c8_i32_30 = arith.constant 8 : i32
    %88 = arith.muli %c3_i32, %c8_i32_30 : i32
    %89 = tpu.assume_multiple %88, 8 : i32
    %90 = arith.index_cast %89 : i32 to index
    %c0_31 = arith.constant 0 : index
    %91 = vector.load %arg9[%90, %c0_31] : memref<64x128xf32, #tpu.memory_space<vmem>>, vector<8x128xf32>
    %cst_32 = arith.constant dense<0.000000e+00> : vector<8x128xf32>
    %92 = tpu.matmul %85, %13, %cst_32 {dimension_numbers = #tpu.dot_dimension_numbers<[1], [0], [0], [1], [0, 0, 1, 1], [], []>} : vector<8x32xf32>, vector<32x128xf32>, vector<8x128xf32> -> vector<8x128xf32>
    %93 = arith.addf %91, %92 : vector<8x128xf32>
    %94 = vector.extract_strided_slice %93 {offsets = [0, 0], sizes = [8, 96], strides = [1, 1]} : vector<8x128xf32> to vector<8x96xf32>
    %95 = arith.negf %94 : vector<8x96xf32>
    %96 = math.exp %95 : vector<8x96xf32>
    %cst_33 = arith.constant 1.000000e+00 : f32
    %97 = vector.broadcast %cst_33 : f32 to vector<8x96xf32>
    %98 = arith.addf %97, %96 : vector<8x96xf32>
    %99 = arith.divf %97, %98 : vector<8x96xf32>
    %100 = vector.extract_strided_slice %93 {offsets = [0, 96], sizes = [8, 32], strides = [1, 1]} : vector<8x128xf32> to vector<8x32xf32>
    %101 = math.tanh %100 : vector<8x32xf32>
    %102 = vector.extract_strided_slice %99 {offsets = [0, 0], sizes = [8, 32], strides = [1, 1]} : vector<8x96xf32> to vector<8x32xf32>
    %103 = vector.extract_strided_slice %99 {offsets = [0, 32], sizes = [8, 32], strides = [1, 1]} : vector<8x96xf32> to vector<8x32xf32>
    %104 = vector.extract_strided_slice %99 {offsets = [0, 64], sizes = [8, 32], strides = [1, 1]} : vector<8x96xf32> to vector<8x32xf32>
    %105 = arith.mulf %103, %83 : vector<8x32xf32>
    %106 = arith.mulf %102, %101 : vector<8x32xf32>
    %107 = arith.addf %105, %106 : vector<8x32xf32>
    %108 = math.tanh %107 : vector<8x32xf32>
    %109 = arith.mulf %104, %108 : vector<8x32xf32>
    %110 = arith.index_cast %89 : i32 to index
    %c0_34 = arith.constant 0 : index
    %111 = vector.load %arg8[%110, %c0_34] : memref<64x32xf32, #tpu.memory_space<vmem>>, vector<8x32xf32>
    tpu.vector_store %arg8[%110, %c0_34], %109 {strides = array<i32>} : memref<64x32xf32, #tpu.memory_space<vmem>>, vector<8x32xf32>,
    %c4_i32 = arith.constant 4 : i32
    %c8_i32_35 = arith.constant 8 : i32
    %112 = arith.muli %c4_i32, %c8_i32_35 : i32
    %113 = tpu.assume_multiple %112, 8 : i32
    %114 = arith.index_cast %113 : i32 to index
    %c0_36 = arith.constant 0 : index
    %115 = vector.load %arg9[%114, %c0_36] : memref<64x128xf32, #tpu.memory_space<vmem>>, vector<8x128xf32>
    %cst_37 = arith.constant dense<0.000000e+00> : vector<8x128xf32>
    %116 = tpu.matmul %109, %13, %cst_37 {dimension_numbers = #tpu.dot_dimension_numbers<[1], [0], [0], [1], [0, 0, 1, 1], [], []>} : vector<8x32xf32>, vector<32x128xf32>, vector<8x128xf32> -> vector<8x128xf32>
    %117 = arith.addf %115, %116 : vector<8x128xf32>
    %118 = vector.extract_strided_slice %117 {offsets = [0, 0], sizes = [8, 96], strides = [1, 1]} : vector<8x128xf32> to vector<8x96xf32>
    %119 = arith.negf %118 : vector<8x96xf32>
    %120 = math.exp %119 : vector<8x96xf32>
    %cst_38 = arith.constant 1.000000e+00 : f32
    %121 = vector.broadcast %cst_38 : f32 to vector<8x96xf32>
    %122 = arith.addf %121, %120 : vector<8x96xf32>
    %123 = arith.divf %121, %122 : vector<8x96xf32>
    %124 = vector.extract_strided_slice %117 {offsets = [0, 96], sizes = [8, 32], strides = [1, 1]} : vector<8x128xf32> to vector<8x32xf32>
    %125 = math.tanh %124 : vector<8x32xf32>
    %126 = vector.extract_strided_slice %123 {offsets = [0, 0], sizes = [8, 32], strides = [1, 1]} : vector<8x96xf32> to vector<8x32xf32>
    %127 = vector.extract_strided_slice %123 {offsets = [0, 32], sizes = [8, 32], strides = [1, 1]} : vector<8x96xf32> to vector<8x32xf32>
    %128 = vector.extract_strided_slice %123 {offsets = [0, 64], sizes = [8, 32], strides = [1, 1]} : vector<8x96xf32> to vector<8x32xf32>
    %129 = arith.mulf %127, %107 : vector<8x32xf32>
    %130 = arith.mulf %126, %125 : vector<8x32xf32>
    %131 = arith.addf %129, %130 : vector<8x32xf32>
    %132 = math.tanh %131 : vector<8x32xf32>
    %133 = arith.mulf %128, %132 : vector<8x32xf32>
    %134 = arith.index_cast %113 : i32 to index
    %c0_39 = arith.constant 0 : index
    %135 = vector.load %arg8[%134, %c0_39] : memref<64x32xf32, #tpu.memory_space<vmem>>, vector<8x32xf32>
    tpu.vector_store %arg8[%134, %c0_39], %133 {strides = array<i32>} : memref<64x32xf32, #tpu.memory_space<vmem>>, vector<8x32xf32>,
    %c5_i32 = arith.constant 5 : i32
    %c8_i32_40 = arith.constant 8 : i32
    %136 = arith.muli %c5_i32, %c8_i32_40 : i32
    %137 = tpu.assume_multiple %136, 8 : i32
    %138 = arith.index_cast %137 : i32 to index
    %c0_41 = arith.constant 0 : index
    %139 = vector.load %arg9[%138, %c0_41] : memref<64x128xf32, #tpu.memory_space<vmem>>, vector<8x128xf32>
    %cst_42 = arith.constant dense<0.000000e+00> : vector<8x128xf32>
    %140 = tpu.matmul %133, %13, %cst_42 {dimension_numbers = #tpu.dot_dimension_numbers<[1], [0], [0], [1], [0, 0, 1, 1], [], []>} : vector<8x32xf32>, vector<32x128xf32>, vector<8x128xf32> -> vector<8x128xf32>
    %141 = arith.addf %139, %140 : vector<8x128xf32>
    %142 = vector.extract_strided_slice %141 {offsets = [0, 0], sizes = [8, 96], strides = [1, 1]} : vector<8x128xf32> to vector<8x96xf32>
    %143 = arith.negf %142 : vector<8x96xf32>
    %144 = math.exp %143 : vector<8x96xf32>
    %cst_43 = arith.constant 1.000000e+00 : f32
    %145 = vector.broadcast %cst_43 : f32 to vector<8x96xf32>
    %146 = arith.addf %145, %144 : vector<8x96xf32>
    %147 = arith.divf %145, %146 : vector<8x96xf32>
    %148 = vector.extract_strided_slice %141 {offsets = [0, 96], sizes = [8, 32], strides = [1, 1]} : vector<8x128xf32> to vector<8x32xf32>
    %149 = math.tanh %148 : vector<8x32xf32>
    %150 = vector.extract_strided_slice %147 {offsets = [0, 0], sizes = [8, 32], strides = [1, 1]} : vector<8x96xf32> to vector<8x32xf32>
    %151 = vector.extract_strided_slice %147 {offsets = [0, 32], sizes = [8, 32], strides = [1, 1]} : vector<8x96xf32> to vector<8x32xf32>
    %152 = vector.extract_strided_slice %147 {offsets = [0, 64], sizes = [8, 32], strides = [1, 1]} : vector<8x96xf32> to vector<8x32xf32>
    %153 = arith.mulf %151, %131 : vector<8x32xf32>
    %154 = arith.mulf %150, %149 : vector<8x32xf32>
    %155 = arith.addf %153, %154 : vector<8x32xf32>
    %156 = math.tanh %155 : vector<8x32xf32>
    %157 = arith.mulf %152, %156 : vector<8x32xf32>
    %158 = arith.index_cast %137 : i32 to index
    %c0_44 = arith.constant 0 : index
    %159 = vector.load %arg8[%158, %c0_44] : memref<64x32xf32, #tpu.memory_space<vmem>>, vector<8x32xf32>
    tpu.vector_store %arg8[%158, %c0_44], %157 {strides = array<i32>} : memref<64x32xf32, #tpu.memory_space<vmem>>, vector<8x32xf32>,
    %c6_i32 = arith.constant 6 : i32
    %c8_i32_45 = arith.constant 8 : i32
    %160 = arith.muli %c6_i32, %c8_i32_45 : i32
    %161 = tpu.assume_multiple %160, 8 : i32
    %162 = arith.index_cast %161 : i32 to index
    %c0_46 = arith.constant 0 : index
    %163 = vector.load %arg9[%162, %c0_46] : memref<64x128xf32, #tpu.memory_space<vmem>>, vector<8x128xf32>
    %cst_47 = arith.constant dense<0.000000e+00> : vector<8x128xf32>
    %164 = tpu.matmul %157, %13, %cst_47 {dimension_numbers = #tpu.dot_dimension_numbers<[1], [0], [0], [1], [0, 0, 1, 1], [], []>} : vector<8x32xf32>, vector<32x128xf32>, vector<8x128xf32> -> vector<8x128xf32>
    %165 = arith.addf %163, %164 : vector<8x128xf32>
    %166 = vector.extract_strided_slice %165 {offsets = [0, 0], sizes = [8, 96], strides = [1, 1]} : vector<8x128xf32> to vector<8x96xf32>
    %167 = arith.negf %166 : vector<8x96xf32>
    %168 = math.exp %167 : vector<8x96xf32>
    %cst_48 = arith.constant 1.000000e+00 : f32
    %169 = vector.broadcast %cst_48 : f32 to vector<8x96xf32>
    %170 = arith.addf %169, %168 : vector<8x96xf32>
    %171 = arith.divf %169, %170 : vector<8x96xf32>
    %172 = vector.extract_strided_slice %165 {offsets = [0, 96], sizes = [8, 32], strides = [1, 1]} : vector<8x128xf32> to vector<8x32xf32>
    %173 = math.tanh %172 : vector<8x32xf32>
    %174 = vector.extract_strided_slice %171 {offsets = [0, 0], sizes = [8, 32], strides = [1, 1]} : vector<8x96xf32> to vector<8x32xf32>
    %175 = vector.extract_strided_slice %171 {offsets = [0, 32], sizes = [8, 32], strides = [1, 1]} : vector<8x96xf32> to vector<8x32xf32>
    %176 = vector.extract_strided_slice %171 {offsets = [0, 64], sizes = [8, 32], strides = [1, 1]} : vector<8x96xf32> to vector<8x32xf32>
    %177 = arith.mulf %175, %155 : vector<8x32xf32>
    %178 = arith.mulf %174, %173 : vector<8x32xf32>
    %179 = arith.addf %177, %178 : vector<8x32xf32>
    %180 = math.tanh %179 : vector<8x32xf32>
    %181 = arith.mulf %176, %180 : vector<8x32xf32>
    %182 = arith.index_cast %161 : i32 to index
    %c0_49 = arith.constant 0 : index
    %183 = vector.load %arg8[%182, %c0_49] : memref<64x32xf32, #tpu.memory_space<vmem>>, vector<8x32xf32>
    tpu.vector_store %arg8[%182, %c0_49], %181 {strides = array<i32>} : memref<64x32xf32, #tpu.memory_space<vmem>>, vector<8x32xf32>,
    %c7_i32 = arith.constant 7 : i32
    %c8_i32_50 = arith.constant 8 : i32
    %184 = arith.muli %c7_i32, %c8_i32_50 : i32
    %185 = tpu.assume_multiple %184, 8 : i32
    %186 = arith.index_cast %185 : i32 to index
    %c0_51 = arith.constant 0 : index
    %187 = vector.load %arg9[%186, %c0_51] : memref<64x128xf32, #tpu.memory_space<vmem>>, vector<8x128xf32>
    %cst_52 = arith.constant dense<0.000000e+00> : vector<8x128xf32>
    %188 = tpu.matmul %181, %13, %cst_52 {dimension_numbers = #tpu.dot_dimension_numbers<[1], [0], [0], [1], [0, 0, 1, 1], [], []>} : vector<8x32xf32>, vector<32x128xf32>, vector<8x128xf32> -> vector<8x128xf32>
    %189 = arith.addf %187, %188 : vector<8x128xf32>
    %190 = vector.extract_strided_slice %189 {offsets = [0, 0], sizes = [8, 96], strides = [1, 1]} : vector<8x128xf32> to vector<8x96xf32>
    %191 = arith.negf %190 : vector<8x96xf32>
    %192 = math.exp %191 : vector<8x96xf32>
    %cst_53 = arith.constant 1.000000e+00 : f32
    %193 = vector.broadcast %cst_53 : f32 to vector<8x96xf32>
    %194 = arith.addf %193, %192 : vector<8x96xf32>
    %195 = arith.divf %193, %194 : vector<8x96xf32>
    %196 = vector.extract_strided_slice %189 {offsets = [0, 96], sizes = [8, 32], strides = [1, 1]} : vector<8x128xf32> to vector<8x32xf32>
    %197 = math.tanh %196 : vector<8x32xf32>
    %198 = vector.extract_strided_slice %195 {offsets = [0, 0], sizes = [8, 32], strides = [1, 1]} : vector<8x96xf32> to vector<8x32xf32>
    %199 = vector.extract_strided_slice %195 {offsets = [0, 32], sizes = [8, 32], strides = [1, 1]} : vector<8x96xf32> to vector<8x32xf32>
    %200 = vector.extract_strided_slice %195 {offsets = [0, 64], sizes = [8, 32], strides = [1, 1]} : vector<8x96xf32> to vector<8x32xf32>
    %201 = arith.mulf %199, %179 : vector<8x32xf32>
    %202 = arith.mulf %198, %197 : vector<8x32xf32>
    %203 = arith.addf %201, %202 : vector<8x32xf32>
    %204 = math.tanh %203 : vector<8x32xf32>
    %205 = arith.mulf %200, %204 : vector<8x32xf32>
    %206 = arith.index_cast %185 : i32 to index
    %c0_54 = arith.constant 0 : index
    %207 = vector.load %arg8[%206, %c0_54] : memref<64x32xf32, #tpu.memory_space<vmem>>, vector<8x32xf32>
    tpu.vector_store %arg8[%206, %c0_54], %205 {strides = array<i32>} : memref<64x32xf32, #tpu.memory_space<vmem>>, vector<8x32xf32>,
    %c8_i32_55 = arith.constant 8 : i32
    %c1_i32_56 = arith.constant 1 : i32
    %208 = arith.cmpi eq, %arg0, %c1_i32_56 : i32
    %209 = arith.extui %208 : i1 to i32
    %c0_i32_57 = arith.constant 0 : i32
    %210 = arith.cmpi ne, %209, %c0_i32_57 : i32
    scf.if %210 {
      %c0_58 = arith.constant 0 : index
      %c0_59 = arith.constant 0 : index
      %211 = vector.load %arg5[%c0_58, %c0_59] : memref<32x128xf32, #tpu.memory_space<vmem>>, vector<32x128xf32>
      %cst_60 = arith.constant dense<0.000000e+00> : vector<8x128xf32>
      %212 = tpu.matmul %205, %211, %cst_60 {dimension_numbers = #tpu.dot_dimension_numbers<[1], [0], [0], [1], [0, 0, 1, 1], [], []>} : vector<8x32xf32>, vector<32x128xf32>, vector<8x128xf32> -> vector<8x128xf32>
      %c0_61 = arith.constant 0 : index
      %c0_62 = arith.constant 0 : index
      %213 = vector.load %arg6[%c0_61, %c0_62] : memref<1x128xf32, #tpu.memory_space<vmem>>, vector<1x128xf32>
      %214 = vector.broadcast %213 : vector<1x128xf32> to vector<8x128xf32>
      %215 = arith.addf %212, %214 : vector<8x128xf32>
      %c0_63 = arith.constant 0 : index
      %c0_64 = arith.constant 0 : index
      %216 = vector.load %arg7[%c0_63, %c0_64] : memref<8x128xf32, #tpu.memory_space<vmem>>, vector<8x128xf32>
      tpu.vector_store %arg7[%c0_63, %c0_64], %215 {strides = array<i32>} : memref<8x128xf32, #tpu.memory_space<vmem>>, vector<8x128xf32>,
    } else {
    }
    return
  }
  func.func @transform_0(%arg0: i32) -> (i32, i32) {
    %c0_i32 = arith.constant 0 : i32
    %c0_i32_0 = arith.constant 0 : i32
    %c0_i32_1 = arith.constant 0 : i32
    return %c0_i32, %c0_i32_0 : i32, i32
  }
  func.func @transform_1(%arg0: i32) -> (i32, i32, i32) {
    %c0_i32 = arith.constant 0 : i32
    %c0_i32_0 = arith.constant 0 : i32
    %c0_i32_1 = arith.constant 0 : i32
    return %arg0, %c0_i32, %c0_i32_0 : i32, i32, i32
  }
  func.func @transform_2(%arg0: i32) -> (i32, i32, i32) {
    %c0_i32 = arith.constant 0 : i32
    %c0_i32_0 = arith.constant 0 : i32
    %c0_i32_1 = arith.constant 0 : i32
    return %arg0, %c0_i32, %c0_i32_0 : i32, i32, i32
  }
  func.func @transform_3(%arg0: i32) -> (i32, i32, i32) {
    %c0_i32 = arith.constant 0 : i32
    %c0_i32_0 = arith.constant 0 : i32
    %c0_i32_1 = arith.constant 0 : i32
    return %arg0, %c0_i32, %c0_i32_0 : i32, i32, i32
  }
  func.func @transform_4(%arg0: i32) -> (i32, i32) {
    %c0_i32 = arith.constant 0 : i32
    %c0_i32_0 = arith.constant 0 : i32
    %c0_i32_1 = arith.constant 0 : i32
    return %c0_i32, %c0_i32_0 : i32, i32
  }
  func.func @transform_5(%arg0: i32) -> (i32, i32) {
    %c0_i32 = arith.constant 0 : i32
    %c0_i32_0 = arith.constant 0 : i32
    %c0_i32_1 = arith.constant 0 : i32
    return %c0_i32, %c0_i32_0 : i32, i32
  }
  func.func @transform_6(%arg0: i32) -> (i32, i32) {
    %c0_i32 = arith.constant 0 : i32
    %c0_i32_0 = arith.constant 0 : i32
    %c0_i32_1 = arith.constant 0 : i32
    return %c0_i32, %c0_i32_0 : i32, i32
  }
}

</mosaic_0001>

<bundles_post_ra>
// kernel: tpu_custom_call.1
= control target key start
LH: loop header
LB: loop body
LE: loop exit
PB: predicated region body
PF: predicated region fallthrough
CT: control target
= control target key end

     0   :  { %11 = vsyncpa [#allocation5], 0  ;;  %s2345_s0 = inlined_call_operand.vmem [shape: f32[64,32], index: 0, kind: input, shape index: {}]   ;;  %s2346_s1 = inlined_call_operand.vmem [shape: f32[2,32,128], index: 1, kind: input, shape index: {}]   ;;  %s2347_s2 = inlined_call_operand.hbm [shape: f32[2,32,128], index: 2, kind: input, shape index: {}]   ;;  %s2348_s3 = inlined_call_operand.vmem [shape: f32[2,1,128], index: 3, kind: input, shape index: {}]   ;;  %s2349_s4 = inlined_call_operand.vmem [shape: f32[32,128], index: 4, kind: input, shape index: {}]   ;;  %s2350_s5 = inlined_call_operand.vmem [shape: f32[1,128], index: 5, kind: input, shape index: {}]   ;;  %s2351_s6 = inlined_call_operand.hbm [shape: f32[8,128], index: 6, kind: output, shape index: {}]  }
   0x1   :  { %13 = vsyncpa [#allocation5 + $0x1], 0 }
   0x2   :  { %14 = vsyncpa [#allocation6], 0  ;;  %s2024_s21 = smov 0   ;;  %s2026_s22 = smov 0  }
   0x3   :  { %s2028_s23 = smov 0   ;;  %s2030_s24 = smov 0  }
   0x4 LB: > { %s2043_s25 = sadd.s32 4294967295, %s1975_s24   ;;  %s2046_s26 = sadd.s32 1, %s1975_s24   ;;  %s1975_s24 = sphi %s2030_s24, %s2358_s24   ;;  %s1971_s23 = sphi %s2028_s23, %s2357_s23   ;;  %s1967_s22 = sphi %s2026_s22, %s2356_s22   ;;  %s1963_s21 = sphi %s2024_s21, %s2355_s21  }
   0x5   : > { %s71_s27 = ssub.s32 %s1975_s24, %s2046_s26  ;;  %s74_s28 = sadd.s32 1, %s1971_s23 }
   0x6   : > { %p72_p0 = scmp.eq.s32.totalorder %s71_s27, 0  ;;  %p81_p1 = scmp.ne.s32.totalorder %s1971_s23, %s1967_s22 }
   0x7   : > { %p82_p2 = scmp.eq.s32.totalorder %s1975_s24, 0  ;;  %p87_p3 = scmp.ne.s32.totalorder %s1967_s22, %s1963_s21 }
   0x8   : > { %s2056_s29 = scalar_select %p72_p0, %s1971_s23, %s74_s28  }
   0x9   : > { %p83_p4 = por %p82_p2, %p81_p1  ;;  %p88_p5 = scmp.eq.s32.totalorder %s2043_s25, 0 }
   0xa   : > { %p1771_p6 = scmp.lt.s32.totalorder %s1975_s24, 2  ;;  %s217_s7 = sand.u32 1, %s1971_s23  }
   0xb   : > { %p2060_p7 = por %p88_p5, %p87_p3  ;;  %s1482_s8 = sshll.u32 %s217_s7, 5 }
   0xc   : > { %s1521_s9 = sshll.u32 %s1975_s24, 9  ;;  %s221_s13 = scalar_lea.vmem [#allocation4], %s1482_s8 }
   0xd   : > { %s2069_s12 = scalar_lea.hbm %s2347_s2, %s1521_s9  ;;  %s228_s14 = sshll.u32 %s221_s13, 4  ;;  %s2071_s14 = int_to_ptr.vmem [resolvable:$true] %s228_s14 }
   0xe   : > { %p2073_p8 = pnand %p1771_p6, %p83_p4  ;;  %s2078_s16 = scalar_lea.sflag [#allocation5], %s217_s7 }
   0xf   : > { %s1881_s17 = scalar_lea.hbm %s2069_s12, 512  ;;  %s1886_s20 = scalar_lea.hbm %s2347_s2, 1024 }
  0x10   : > { %p1882_p10 = scmp.ne.s32.totalorder %s2069_s12, %s1881_s17  ;;  %p1883_p11 = pneg %p2073_p8 }
  0x11   : > { %p1887_p0 = scmp.lt.u32.totalorder %s2069_s12, %s2347_s2  ;;  %p1888_p1 = scmp.lt.u32.totalorder %s1886_s20, %s1881_s17 }
  0x12   : > { %p1884_p12 = pnand %p1883_p11, %p1882_p10  ;;  %p1890_p3 = scmp.lt.u32.totalorder %s1881_s17, %s2069_s12 }
  0x13   : > { %p1889_p2 = por %p1888_p1, %p1887_p0 }
  0x14   : > { %p1885_p13 = pneg %p1884_p12 }
  0x15   : > { %p1891_p4 = por %p1890_p3, %p1889_p2 }
  0x17   : > { %p1892_p5 = pnand %p1891_p4, %p1885_p13 }
  0x19   : > { %1895 = shalt.err (!%p1892_p5)
}
  0x1a   : > { %s1896_s28 = scalar_lea.vmem %s2071_s14, 512  ;;  %s1977_s7 = smov [#allocation4]  }
  0x1b   : > { %p1897_p6 = scmp.ne.s32.totalorder %s2071_s14, %s1896_s28  ;;  %s1901_s8 = sshll.u32 %s1977_s7, 4  ;;  %s1902_s8 = int_to_ptr.vmem [resolvable:$false] %s1901_s8 }
  0x1c   : > { %s1903_s9 = scalar_lea.vmem %s1902_s8, 1024  ;;  %p1904_p9 = scmp.lt.s32.totalorder %s2071_s14, %s1902_s8 }
  0x1d   : > { %p1899_p10 = pnand %p1897_p6, %p1883_p11  ;;  %p1905_p0 = scmp.lt.s32.totalorder %s1903_s9, %s1896_s28 }
  0x1f   : > { %p1900_p12 = pneg %p1899_p10  ;;  %p1906_p1 = por %p1905_p0, %p1904_p9 }
  0x21   : > { %p1907_p2 = pnand %p1906_p1, %p1900_p12 }
  0x23   : > { %1910 = shalt.err (!%p1907_p2)
}
  0x24   : > { %s1978_s10 = smov 128   ;;  %s1979_s11 = smov 8  }
  0x25   : > { %1770 = dma.hbm_to_vmem [thread:$0]  (!%p2073_p8), %s2069_s12, 512, %s2071_s14, %s2078_s16, %s1978_s10, %s1978_s10, %s1979_s11  }
  0x26   : > { %p242_p11 = scmp.lt.s32.totalorder %s1975_s24, 3  ;;  %p2354_p13 = scmp.ge.s32.totalorder %s1975_s24, 1 }
  0x28   : > { %p243_p3 = pnand %p2354_p13, %p242_p11 }
  0x29   : > { %s248_s13 = sand.u32 (!%p243_p3), 1, %s1967_s22  }
  0x2a   : > { %246 = sbr.rel (%p243_p3) target bundleno = 5930 (0x172a), region = 44  ;;  %s1486_s17 = sshll.u32 (!%p243_p3), %s248_s13, 5 }
  0x2b   : > { %s249_s18 = scalar_lea.sflag (!%p243_p3), [#allocation5], %s248_s13  ;;  %s2110_s19 = scalar_lea.vmem (!%p243_p3), [#allocation4], %s1486_s17 }
  0x31   : > { %1954 = dma.done.wait (%p2060_p7), %s249_s18, 512  }
  0x32   : > { %1956 = vsyncadd (%p2060_p7), %s249_s18, 4294966784  ;;  %p284_p9 = scmp.lt.s32.totalorder %s2043_s25, 1  ;;  %p1489_p8 = scmp.ne.s32.totalorder %s2043_s25, 0 }
  0x33   : > { %v296_v0 = vld [vmem:[%s2345_s0] sm:$0xff] (!%p1489_p8)  ;;  %vm304_vm0 = vcmask (!%p1489_p8), 261120   ;;  %v297_v1 = vld [vmem:[%s2345_s0 + $0x8] sm:$0xff] (!%p1489_p8)  ;;  %v298_v2 = vld [vmem:[%s2345_s0 + $0x10] sm:$0xff] (!%p1489_p8) }
  0x34   : > { %s2118_s12 = scalar_select %p284_p9, %s2043_s25, 1 }
  0x35   : > { %295 = sbr.rel (%p1489_p8) target bundleno = 60 (0x3c), region = 52  ;;  %305 = vst.msk [vmem:[#allocation2] sm:$0xff] (!%p1489_p8), %vm304_vm0, %v296_v0  ;;  %306 = vst.msk [vmem:[#allocation2 + $0x8] sm:$0xff] (!%p1489_p8), %vm304_vm0, %v297_v1  ;;  %v299_v3 = vld [vmem:[%s2345_s0 + $0x18] sm:$0xff] (!%p1489_p8)  ;;  %v300_v4 = vld [vmem:[%s2345_s0 + $0x20] sm:$0xff] (!%p1489_p8) }
  0x36   : > { %s1522_s24 = sshll.u32 %s2118_s12, 5  ;;  %s291_s16 = scalar_lea.vmem %s2348_s3, %s2118_s12  ;;  %307 = vst.msk [vmem:[#allocation2 + $0x10] sm:$0xff] (!%p1489_p8), %vm304_vm0, %v298_v2  ;;  %v301_v5 = vld [vmem:[%s2345_s0 + $0x28] sm:$0xff] (!%p1489_p8)  ;;  %308 = vst.msk [vmem:[#allocation2 + $0x18] sm:$0xff] (!%p1489_p8), %vm304_vm0, %v299_v3  ;;  %v302_v6 = vld [vmem:[%s2345_s0 + $0x30] sm:$0xff] (!%p1489_p8) }
  0x37   : > { %s288_s27 = scalar_lea.vmem %s2346_s1, %s1522_s24  ;;  %309 = vst.msk [vmem:[#allocation2 + $0x20] sm:$0xff] (!%p1489_p8), %vm304_vm0, %v300_v4  ;;  %310 = vst.msk [vmem:[#allocation2 + $0x28] sm:$0xff] (!%p1489_p8), %vm304_vm0, %v301_v5  ;;  %v303_v7 = vld [vmem:[%s2345_s0 + $0x38] sm:$0xff] (!%p1489_p8) }
  0x38   : > { %311 = vst.msk [vmem:[#allocation2 + $0x30] sm:$0xff] (!%p1489_p8), %vm304_vm0, %v302_v6  ;;  %312 = vst.msk [vmem:[#allocation2 + $0x38] sm:$0xff] (!%p1489_p8), %vm304_vm0, %v303_v7 }
  0x3c PF: > { %v321_v8 = vld [vmem:[%s288_s27] sm:$0xff]  ;;  %v322_v9 = vld [vmem:[%s288_s27 + $0x8] sm:$0xff]  ;;  %vm332_vm1 = vcmask 261120   ;;  %v1980_v12 = vmov 0.0|0.0   ;;  %v323_v14 = vld [vmem:[%s288_s27 + $0x10] sm:$0xff]  ;;  %vm1981_vm2 = vmmov 0  }
  0x3d   : > { %v470_v10 = vld [vmem:[%s2110_s19] sm:$0xff]  ;;  %v1699_v11 = vpack.c.bf16 %v322_v9, %v321_v8  ;;  %1707 = vmatprep.subr.bf16.mxu1 %v1980_v12  ;;  %v471_v13 = vld [vmem:[%s2110_s19 + $0x8] sm:$0xff]  ;;  %v324_v15 = vld [vmem:[%s288_s27 + $0x18] sm:$0xff]  ;;  %v1982_v21 = vmov 0.0   ;;  %s1983_s28 = smov 32   ;;  %s1984_s12 = smov 64  }
  0x3e   : > { %v2156_v16 = vpack.c.bf16 %v471_v13, %v470_v10  ;;  %v1703_v17 = vpack.c.bf16 %v324_v15, %v323_v14  ;;  %v313_v18 = vld [vmem:[#allocation2] sm:$0xff]  ;;  %v472_v19 = vld [vmem:[%s2110_s19 + $0x10] sm:$0xff]  ;;  %v473_v20 = vld [vmem:[%s2110_s19 + $0x18] sm:$0xff]  ;;  %1608 = vmatprep.mubr.msk.f32.mxu1 %vm1981_vm2, %v1982_v21  ;;  %p1514_p7 = scmp.ne.s32.totalorder %s2043_s25, 1 }
  0x3f   : > { %1700 = vmatprep.subr.bf16.mxu0 %v1699_v11  ;;  %1588 = vmatprep.mubr.msk.f32.mxu0 %vm332_vm1, %v313_v18  ;;  %v2164_v22 = vpack.c.bf16 %v473_v20, %v472_v19  ;;  %v314_v23 = vld [vmem:[#allocation2 + $0x8] sm:$0xff]  ;;  %v2187_v24 = vld [vmem:[%s291_s16] ss:$0 sm:$0xff]  ;;  %v315_v59 = vld [vmem:[#allocation2 + $0x10] sm:$0xff]  ;;  %vm1986_vm3 = vmmov (!%p1514_p7), 0  }
  0x40   : > { %1702 = vmatpush3.bf16.msra.mxu0 %v1699_v11  ;;  %1709 = vmatpush3.bf16.msra.mxu1 %v2156_v16  ;;  %v316_v60 = vld [vmem:[#allocation2 + $0x18] sm:$0xff]  ;;  %v317_v61 = vld [vmem:[#allocation2 + $0x20] sm:$0xff]  ;;  %v318_v62 = vld [vmem:[#allocation2 + $0x28] sm:$0xff] }
  0x41   : > { %1704 = vmatprep.subr.bf16.mxu0 %v1703_v17  ;;  %1710 = vmatprep.subr.bf16.mxu1 %v1980_v12  ;;  %v319_v63 = vld [vmem:[#allocation2 + $0x30] sm:$0xff]  ;;  %v320_v0 = vld [vmem:[#allocation2 + $0x38] sm:$0xff] }
  0x44   : > { %1706 = vmatpush3.bf16.msra.mxu0 %v1703_v17  ;;  %1712 = vmatpush3.bf16.msra.mxu1 %v2164_v22 }
  0x45   : > { %1713 = vmatprep.subr.bf16.mxu1 %v1980_v12  ;;  %1719 = vmatprep.subr.bf16.mxu0 %v1980_v12 }
  0x47   : > { %1589 = vmatmul.mubr.msk.f32.vlgmr.msra.gmra.mrb[0].mxu0 %vm332_vm1, %v314_v23  ;;  %1609 = vmatmul.mubr.f32.vlgmr.msra.gmra.mrb[0].mxu1 %v1982_v21 }
  0x48   : > { %1715 = vmatpush3.bf16.msra.mxu1 %v2156_v16  ;;  %1619 = vmatprep.mubr.msk.f32.mxu1 %vm1981_vm2, %v1982_v21 }
  0x49   : > { %1716 = vmatprep.subr.bf16.mxu1 %v1980_v12  ;;  %1721 = vmatpush3.bf16.msra.mxu0 %v2156_v16 }
  0x4a   : > { %1722 = vmatprep.subr.bf16.mxu0 %v1980_v12  ;;  %1591 = vmatprep.mubr.msk.f32.mxu0 %vm332_vm1, %v315_v59 }
  0x4b   : > { %1592 = vmatmul.mubr.msk.f32.gmra.mrb[2].mxu0 %vm332_vm1, %v316_v60 }
  0x4c   : > { %1718 = vmatpush3.bf16.msra.mxu1 %v2164_v22  ;;  %1594 = vmatprep.mubr.msk.f32.mxu0 %vm332_vm1, %v317_v61 }
  0x4d   : > { %1724 = vmatpush3.bf16.msra.mxu0 %v2164_v22  ;;  %1725 = vmatprep.subr.bf16.mxu1 %v1980_v12 }
  0x4e   : > { %1731 = vmatprep.subr.bf16.mxu0 %v1980_v12 }
  0x4f   : > { %1595 = vmatmul.mubr.msk.f32.gmra.mrb[4].mxu0 %vm332_vm1, %v318_v62 }
  0x50   : > { %1597 = vmatprep.mubr.msk.f32.mxu0 %vm332_vm1, %v319_v63 }
  0x53   : > { %1598 = vmatmul.mubr.msk.f32.gmra.mrb[6].mxu0 %vm332_vm1, %v320_v0 }
  0x54   : > { %1630 = vmatprep.mubr.msk.f32.mxu0 %vm1981_vm2, %v1982_v21 }
 0x11a   : > { %v1590_v25 = vpop.f32.mrb[0].mxu0  ;;  %v544_v26 = vpop.f32.mrb[0].mxu1 }
 0x11b   : > { %v423_v27 = vpop.f32.mrb[1].mxu0  ;;  %v1610_v28 = vpop.f32.mrb[1].mxu1  ;;  %v429_v45 = vadd.f32 %v1590_v25, %v2187_v24 }
 0x11c   : > { %v424_v29 = vadd.f32 %v2187_v24, %v423_v27 }
 0x11e   : > { %v548_v30 = vadd.f32 %v544_v26, %v424_v29  ;;  %v1593_v4 = vpop.f32.mrb[2].mxu0 }
 0x11f   : > { %v433_v5 = vpop.f32.mrb[3].mxu0 }
 0x120   : > { %1817 = vtanh.f32 %v548_v30  ;;  %v1499_v32 = vmul.f32 -1.442695, %v548_v30  ;;  %v434_v11 = vadd.f32 %v2187_v24, %v433_v5 }
 0x122   : > { %1819 = vpow2.f32 %v1499_v32  ;;  %v2215_v6 = vpop.f32.mrb[4].mxu0 }
 0x123   : > { %v2217_v7 = vpop.f32.mrb[5].mxu0 }
 0x126   : > { %v2219_v8 = vpop.f32.mrb[6].mxu0 }
 0x127   : > { %v2221_v9 = vpop.f32.mrb[7].mxu0 }
 0x12a   : > { %v1818_v31 = vpop.eup %1817 }
 0x12b   : > { %558 = vrot.lane.b32.xlu0 %v1818_v31, %s1983_s28 }
 0x12c   : > { %v1820_v33 = vpop.eup %1819 }
 0x12d   : > { %v552_v34 = vadd.f32 1.0, %v1820_v33 }
 0x12f   : > { %1821 = vrcp.f32 %v552_v34  ;;  %v439_v34 = vadd.f32 %v1593_v4, %v2187_v24 }
 0x139   : > { %v1822_v35 = vpop.eup %1821 }
 0x13a   : > { %v556_v38 = vmul.f32 0.0, %v1822_v35 }
 0x19d   : > { %v559_v36 = vpop.permute.xlu0 %558 }
 0x19e   : > { %v561_v37 = vmul.f32 %v1822_v35, %v559_v36 }
 0x1a0   : > { %563 = vrot.lane.b32.xlu0 %v561_v37, %s1983_s28 }
 0x212   : > { %v564_v39 = vpop.permute.xlu0 %563 }
 0x213   : > { %v566_v40 = vadd.f32 %v564_v39, %v556_v38 }
 0x215   : > { %1823 = vtanh.f32 %v566_v40 }
 0x21f   : > { %v1824_v41 = vpop.eup %1823 }
 0x220   : > { %569 = vrot.lane.b32.xlu1 %v1824_v41, %s1983_s28 }
 0x292   : > { %v570_v42 = vpop.permute.xlu1 %569 }
 0x293   : > { %v572_v43 = vmul.f32 %v1822_v35, %v570_v42 }
 0x295   : > { %574 = vrot.lane.b32.xlu1 %v572_v43, %s1984_s12 }
 0x307   : > { %v575_v44 = vpop.permute.xlu1 %574 }
 0x308   : > { %577 = vst.msk [vmem:[#allocation2] sm:$0xff] %vm332_vm1, %v575_v44  ;;  %1620 = vmatmul.mubr.msk.f32.vlgmr.msra.gmra.mrb[2].mxu1 %vm332_vm1, %v575_v44 }
 0x309   : > { %1727 = vmatpush3.bf16.msra.mxu1 %v2156_v16  ;;  %1641 = vmatprep.mubr.msk.f32.mxu1 %vm1981_vm2, %v1982_v21 }
 0x30a   : > { %1728 = vmatprep.subr.bf16.mxu1 %v1980_v12 }
 0x30d   : > { %1730 = vmatpush3.bf16.msra.mxu1 %v2164_v22 }
 0x30e   : > { %1737 = vmatprep.subr.bf16.mxu1 %v1980_v12 }
 0x3db   : > { %v648_v46 = vpop.f32.mrb[2].mxu1 }
 0x3dc   : > { %v652_v47 = vadd.f32 %v648_v46, %v429_v45  ;;  %v1621_v48 = vpop.f32.mrb[3].mxu1 }
 0x3de   : > { %1825 = vtanh.f32 %v652_v47  ;;  %v1501_v50 = vmul.f32 -1.442695, %v652_v47 }
 0x3e0   : > { %1827 = vpow2.f32 %v1501_v50 }
 0x3e8   : > { %v1826_v49 = vpop.eup %1825 }
 0x3e9   : > { %662 = vrot.lane.b32.xlu0 %v1826_v49, %s1983_s28 }
 0x3ea   : > { %v1828_v51 = vpop.eup %1827 }
 0x3eb   : > { %v656_v52 = vadd.f32 1.0, %v1828_v51 }
 0x3ed   : > { %1829 = vrcp.f32 %v656_v52  ;;  %v444_v52 = vadd.f32 %v2187_v24, %v2217_v7  ;;  %v449_v7 = vadd.f32 %v2215_v6, %v2187_v24 }
 0x3f7   : > { %v1830_v53 = vpop.eup %1829 }
 0x3f8   : > { %v660_v56 = vmul.f32 %v1830_v53, %v566_v40 }
 0x45b   : > { %v663_v54 = vpop.permute.xlu0 %662 }
 0x45c   : > { %v665_v55 = vmul.f32 %v1830_v53, %v663_v54 }
 0x45e   : > { %667 = vrot.lane.b32.xlu1 %v665_v55, %s1983_s28 }
 0x4d0   : > { %v668_v57 = vpop.permute.xlu1 %667 }
 0x4d1   : > { %v670_v58 = vadd.f32 %v668_v57, %v660_v56 }
 0x4d3   : > { %1831 = vtanh.f32 %v670_v58 }
 0x4dd   : > { %v1832_v1 = vpop.eup %1831 }
 0x4de   : > { %673 = vrot.lane.b32.xlu0 %v1832_v1, %s1983_s28 }
 0x550   : > { %v674_v2 = vpop.permute.xlu0 %673 }
 0x551   : > { %v676_v3 = vmul.f32 %v1830_v53, %v674_v2 }
 0x553   : > { %678 = vrot.lane.b32.xlu1 %v676_v3, %s1984_s12 }
 0x5c5   : > { %v679_v10 = vpop.permute.xlu1 %678 }
 0x5c6   : > { %682 = vst.msk [vmem:[#allocation2 + $0x8] sm:$0xff] %vm332_vm1, %v679_v10  ;;  %1631 = vmatmul.mubr.msk.f32.vlgmr.msra.gmra.mrb[8].mxu0 %vm332_vm1, %v679_v10 }
 0x5c7   : > { %1733 = vmatpush3.bf16.msra.mxu0 %v2156_v16  ;;  %1652 = vmatprep.mubr.msk.f32.mxu0 %vm1981_vm2, %v1982_v21 }
 0x5c8   : > { %1734 = vmatprep.subr.bf16.mxu0 %v1980_v12 }
 0x5cb   : > { %1736 = vmatpush3.bf16.msra.mxu0 %v2164_v22 }
 0x5cc   : > { %1743 = vmatprep.subr.bf16.mxu0 %v1980_v12 }
 0x699   : > { %v753_v13 = vpop.f32.mrb[8].mxu0 }
 0x69a   : > { %v757_v14 = vadd.f32 %v753_v13, %v434_v11  ;;  %v1632_v15 = vpop.f32.mrb[9].mxu0 }
 0x69c   : > { %1833 = vtanh.f32 %v757_v14  ;;  %v1503_v18 = vmul.f32 -1.442695, %v757_v14 }
 0x69e   : > { %1835 = vpow2.f32 %v1503_v18 }
 0x6a6   : > { %v1834_v17 = vpop.eup %1833 }
 0x6a7   : > { %767 = vrot.lane.b32.xlu0 %v1834_v17, %s1983_s28 }
 0x6a8   : > { %v1836_v19 = vpop.eup %1835 }
 0x6a9   : > { %v761_v20 = vadd.f32 1.0, %v1836_v19 }
 0x6ab   : > { %1837 = vrcp.f32 %v761_v20 }
 0x6b5   : > { %v1838_v23 = vpop.eup %1837 }
 0x6b6   : > { %v765_v27 = vmul.f32 %v1838_v23, %v670_v58 }
 0x719   : > { %v768_v25 = vpop.permute.xlu0 %767 }
 0x71a   : > { %v770_v26 = vmul.f32 %v1838_v23, %v768_v25 }
 0x71c   : > { %772 = vrot.lane.b32.xlu1 %v770_v26, %s1983_s28 }
 0x78e   : > { %v773_v28 = vpop.permute.xlu1 %772 }
 0x78f   : > { %v775_v29 = vadd.f32 %v773_v28, %v765_v27  ;;  %v454_v27 = vadd.f32 %v2187_v24, %v2221_v9 }
 0x791   : > { %1839 = vtanh.f32 %v775_v29 }
 0x79b   : > { %v1840_v30 = vpop.eup %1839 }
 0x79c   : > { %778 = vrot.lane.b32.xlu0 %v1840_v30, %s1983_s28 }
 0x80e   : > { %v779_v31 = vpop.permute.xlu0 %778 }
 0x80f   : > { %v781_v32 = vmul.f32 %v1838_v23, %v779_v31 }
 0x811   : > { %783 = vrot.lane.b32.xlu1 %v781_v32, %s1984_s12 }
 0x883   : > { %v784_v33 = vpop.permute.xlu1 %783 }
 0x884   : > { %787 = vst.msk [vmem:[#allocation2 + $0x10] sm:$0xff] %vm332_vm1, %v784_v33  ;;  %1642 = vmatmul.mubr.msk.f32.vlgmr.msra.gmra.mrb[4].mxu1 %vm332_vm1, %v784_v33 }
 0x885   : > { %1739 = vmatpush3.bf16.msra.mxu1 %v2156_v16  ;;  %1663 = vmatprep.mubr.msk.f32.mxu1 %vm1981_vm2, %v1982_v21 }
 0x886   : > { %1740 = vmatprep.subr.bf16.mxu1 %v1980_v12 }
 0x889   : > { %1742 = vmatpush3.bf16.msra.mxu1 %v2164_v22 }
 0x88a   : > { %1749 = vmatprep.subr.bf16.mxu1 %v1980_v12 }
 0x957   : > { %v858_v35 = vpop.f32.mrb[4].mxu1 }
 0x958   : > { %v862_v36 = vadd.f32 %v858_v35, %v439_v34  ;;  %v1643_v37 = vpop.f32.mrb[5].mxu1 }
 0x95a   : > { %1841 = vtanh.f32 %v862_v36  ;;  %v1505_v39 = vmul.f32 -1.442695, %v862_v36 }
 0x95c   : > { %1843 = vpow2.f32 %v1505_v39 }
 0x964   : > { %v1842_v38 = vpop.eup %1841 }
 0x965   : > { %872 = vrot.lane.b32.xlu0 %v1842_v38, %s1983_s28 }
 0x966   : > { %v1844_v40 = vpop.eup %1843 }
 0x967   : > { %v866_v41 = vadd.f32 1.0, %v1844_v40 }
 0x969   : > { %1845 = vrcp.f32 %v866_v41 }
 0x973   : > { %v1846_v42 = vpop.eup %1845 }
 0x974   : > { %v870_v45 = vmul.f32 %v1846_v42, %v775_v29 }
 0x9d7   : > { %v873_v43 = vpop.permute.xlu0 %872 }
 0x9d8   : > { %v875_v44 = vmul.f32 %v1846_v42, %v873_v43 }
 0x9da   : > { %877 = vrot.lane.b32.xlu1 %v875_v44, %s1983_s28  ;;  %v459_v44 = vadd.f32 %v2219_v8, %v2187_v24 }
 0xa4c   : > { %v878_v46 = vpop.permute.xlu1 %877 }
 0xa4d   : > { %v880_v47 = vadd.f32 %v878_v46, %v870_v45 }
 0xa4f   : > { %1847 = vtanh.f32 %v880_v47 }
 0xa59   : > { %v1848_v48 = vpop.eup %1847 }
 0xa5a   : > { %883 = vrot.lane.b32.xlu0 %v1848_v48, %s1983_s28 }
 0xacc   : > { %v884_v49 = vpop.permute.xlu0 %883 }
 0xacd   : > { %v886_v50 = vmul.f32 %v1846_v42, %v884_v49 }
 0xacf   : > { %888 = vrot.lane.b32.xlu1 %v886_v50, %s1984_s12 }
 0xb41   : > { %v889_v51 = vpop.permute.xlu1 %888 }
 0xb42   : > { %892 = vst.msk [vmem:[#allocation2 + $0x18] sm:$0xff] %vm332_vm1, %v889_v51  ;;  %1653 = vmatmul.mubr.msk.f32.vlgmr.msra.gmra.mrb[10].mxu0 %vm332_vm1, %v889_v51 }
 0xb43   : > { %1745 = vmatpush3.bf16.msra.mxu0 %v2156_v16  ;;  %1674 = vmatprep.mubr.msk.f32.mxu0 %vm1981_vm2, %v1982_v21 }
 0xb44   : > { %1746 = vmatprep.subr.bf16.mxu0 %v1980_v12 }
 0xb47   : > { %1748 = vmatpush3.bf16.msra.mxu0 %v2164_v22 }
 0xc15   : > { %v963_v53 = vpop.f32.mrb[10].mxu0 }
 0xc16   : > { %v967_v54 = vadd.f32 %v963_v53, %v444_v52  ;;  %v1654_v55 = vpop.f32.mrb[11].mxu0 }
 0xc18   : > { %1849 = vtanh.f32 %v967_v54  ;;  %v1507_v57 = vmul.f32 -1.442695, %v967_v54 }
 0xc1a   : > { %1851 = vpow2.f32 %v1507_v57 }
 0xc22   : > { %v1850_v56 = vpop.eup %1849 }
 0xc23   : > { %977 = vrot.lane.b32.xlu0 %v1850_v56, %s1983_s28 }
 0xc24   : > { %v1852_v58 = vpop.eup %1851 }
 0xc25   : > { %v971_v59 = vadd.f32 1.0, %v1852_v58 }
 0xc27   : > { %1853 = vrcp.f32 %v971_v59 }
 0xc31   : > { %v1854_v60 = vpop.eup %1853 }
 0xc32   : > { %v975_v63 = vmul.f32 %v1854_v60, %v880_v47 }
 0xc95   : > { %v978_v61 = vpop.permute.xlu0 %977 }
 0xc96   : > { %v980_v62 = vmul.f32 %v1854_v60, %v978_v61  ;;  %v1318_v61 = vld [vmem:[%s2349_s4 + $0x8] sm:$0xff] (!%p1514_p7) }
 0xc98   : > { %982 = vrot.lane.b32.xlu1 %v980_v62, %s1983_s28  ;;  %v1319_v62 = vld [vmem:[%s2349_s4 + $0x10] sm:$0xff] (!%p1514_p7) }
 0xd0a   : > { %v983_v0 = vpop.permute.xlu1 %982 }
 0xd0b   : > { %v985_v1 = vadd.f32 %v983_v0, %v975_v63  ;;  %v1985_v63 = vmov (!%p1514_p7), 0.0|0.0  }
 0xd0c   : > { %1755 = vmatprep.subr.bf16.mxu0 (!%p1514_p7), %v1985_v63 }
 0xd0d   : > { %1855 = vtanh.f32 %v985_v1 }
 0xd17   : > { %v1856_v2 = vpop.eup %1855 }
 0xd18   : > { %988 = vrot.lane.b32.xlu0 %v1856_v2, %s1983_s28  ;;  %v1987_v2 = vmov (!%p1514_p7), 0.0  }
 0xd8a   : > { %v989_v3 = vpop.permute.xlu0 %988 }
 0xd8b   : > { %v991_v4 = vmul.f32 %v1854_v60, %v989_v3  ;;  %v1317_v60 = vld [vmem:[%s2349_s4] sm:$0xff] (!%p1514_p7) }
 0xd8c   : > { %v1756_v0 = vpack.c.bf16 (!%p1514_p7), %v1318_v61, %v1317_v60 }
 0xd8d   : > { %993 = vrot.lane.b32.xlu1 %v991_v4, %s1984_s12  ;;  %v1515_v4 = vld [vmem:[%s2350_s5] ss:$0 sm:$0xff] (!%p1514_p7) }
 0xdff   : > { %v994_v5 = vpop.permute.xlu1 %993 }
 0xe00   : > { %997 = vst.msk [vmem:[#allocation2 + $0x20] sm:$0xff] %vm332_vm1, %v994_v5  ;;  %1664 = vmatmul.mubr.msk.f32.vlgmr.msra.gmra.mrb[6].mxu1 %vm332_vm1, %v994_v5 }
 0xe01   : > { %1751 = vmatpush3.bf16.msra.mxu1 %v2156_v16  ;;  %1685 = vmatprep.mubr.msk.f32.mxu1 %vm1981_vm2, %v1982_v21 }
 0xe02   : > { %1752 = vmatprep.subr.bf16.mxu1 %v1980_v12 }
 0xe05   : > { %1754 = vmatpush3.bf16.msra.mxu1 %v2164_v22 }
 0xed3   : > { %v1068_v10 = vpop.f32.mrb[6].mxu1 }
 0xed4   : > { %v1072_v11 = vadd.f32 %v1068_v10, %v449_v7  ;;  %v1665_v13 = vpop.f32.mrb[7].mxu1 }
 0xed6   : > { %1857 = vtanh.f32 %v1072_v11  ;;  %v1509_v15 = vmul.f32 -1.442695, %v1072_v11 }
 0xed8   : > { %1859 = vpow2.f32 %v1509_v15 }
 0xee0   : > { %v1858_v14 = vpop.eup %1857 }
 0xee1   : > { %1082 = vrot.lane.b32.xlu0 %v1858_v14, %s1983_s28 }
 0xee2   : > { %v1860_v16 = vpop.eup %1859 }
 0xee3   : > { %v1076_v17 = vadd.f32 1.0, %v1860_v16 }
 0xee5   : > { %1861 = vrcp.f32 %v1076_v17 }
 0xeef   : > { %v1862_v21 = vpop.eup %1861 }
 0xef0   : > { %v1080_v22 = vmul.f32 %v1862_v21, %v985_v1  ;;  %v1320_v1 = vld [vmem:[%s2349_s4 + $0x18] sm:$0xff] (!%p1514_p7) }
 0xef1   : > { %v1759_v3 = vpack.c.bf16 (!%p1514_p7), %v1320_v1, %v1319_v62 }
 0xf53   : > { %v1083_v18 = vpop.permute.xlu0 %1082 }
 0xf54   : > { %v1085_v12 = vmul.f32 %v1862_v21, %v1083_v18 }
 0xf56   : > { %1087 = vrot.lane.b32.xlu1 %v1085_v12, %s1983_s28 }
 0xfc8   : > { %v1088_v19 = vpop.permute.xlu1 %1087 }
 0xfc9   : > { %v1090_v6 = vadd.f32 %v1088_v19, %v1080_v22 }
 0xfcb   : > { %1863 = vtanh.f32 %v1090_v6 }
 0xfd5   : > { %v1864_v20 = vpop.eup %1863 }
 0xfd6   : > { %1093 = vrot.lane.b32.xlu0 %v1864_v20, %s1983_s28 }
0x1048   : > { %v1094_v23 = vpop.permute.xlu0 %1093 }
0x1049   : > { %v1096_v25 = vmul.f32 %v1862_v21, %v1094_v23 }
0x104b   : > { %1098 = vrot.lane.b32.xlu1 %v1096_v25, %s1984_s12 }
0x10bd   : > { %v1099_v26 = vpop.permute.xlu1 %1098 }
0x10be   : > { %1102 = vst.msk [vmem:[#allocation2 + $0x28] sm:$0xff] %vm332_vm1, %v1099_v26  ;;  %1675 = vmatmul.mubr.msk.f32.vlgmr.msra.gmra.mrb[12].mxu0 %vm332_vm1, %v1099_v26 }
0x10bf   : > { %1696 = vmatprep.mubr.msk.f32.mxu0 (!%p1514_p7), %vm1986_vm3, %v1987_v2  ;;  %1757 = vmatpush3.bf16.msra.mxu0 (!%p1514_p7), %v1756_v0 }
0x10c0   : > { %1758 = vmatprep.subr.bf16.mxu0 (!%p1514_p7), %v1985_v63 }
0x10c3   : > { %1760 = vmatpush3.bf16.msra.mxu0 (!%p1514_p7), %v1759_v3 }
0x1191   : > { %v1173_v28 = vpop.f32.mrb[12].mxu0 }
0x1192   : > { %v1177_v29 = vadd.f32 %v1173_v28, %v454_v27  ;;  %v1676_v30 = vpop.f32.mrb[13].mxu0 }
0x1194   : > { %1865 = vtanh.f32 %v1177_v29  ;;  %v1511_v32 = vmul.f32 -1.442695, %v1177_v29 }
0x1196   : > { %1867 = vpow2.f32 %v1511_v32 }
0x119e   : > { %v1866_v31 = vpop.eup %1865 }
0x119f   : > { %1187 = vrot.lane.b32.xlu0 %v1866_v31, %s1983_s28 }
0x11a0   : > { %v1868_v33 = vpop.eup %1867 }
0x11a1   : > { %v1181_v34 = vadd.f32 1.0, %v1868_v33 }
0x11a3   : > { %1869 = vrcp.f32 %v1181_v34 }
0x11ad   : > { %v1870_v35 = vpop.eup %1869 }
0x11ae   : > { %v1185_v38 = vmul.f32 %v1870_v35, %v1090_v6 }
0x1211   : > { %v1188_v36 = vpop.permute.xlu0 %1187 }
0x1212   : > { %v1190_v37 = vmul.f32 %v1870_v35, %v1188_v36 }
0x1214   : > { %1192 = vrot.lane.b32.xlu1 %v1190_v37, %s1983_s28 }
0x1286   : > { %v1193_v39 = vpop.permute.xlu1 %1192 }
0x1287   : > { %v1195_v9 = vadd.f32 %v1193_v39, %v1185_v38 }
0x1289   : > { %1871 = vtanh.f32 %v1195_v9 }
0x1293   : > { %v1872_v40 = vpop.eup %1871 }
0x1294   : > { %1198 = vrot.lane.b32.xlu0 %v1872_v40, %s1983_s28 }
0x1306   : > { %v1199_v41 = vpop.permute.xlu0 %1198 }
0x1307   : > { %v1201_v42 = vmul.f32 %v1870_v35, %v1199_v41 }
0x1309   : > { %1203 = vrot.lane.b32.xlu1 %v1201_v42, %s1984_s12 }
0x137b   : > { %v1204_v43 = vpop.permute.xlu1 %1203 }
0x137c   : > { %1207 = vst.msk [vmem:[#allocation2 + $0x30] sm:$0xff] %vm332_vm1, %v1204_v43  ;;  %1686 = vmatmul.mubr.msk.f32.vlgmr.msra.gmra.mrb[8].mxu1 %vm332_vm1, %v1204_v43 }
0x144f   : > { %v1278_v45 = vpop.f32.mrb[8].mxu1 }
0x1450   : > { %v1282_v46 = vadd.f32 %v1278_v45, %v459_v44  ;;  %v1687_v47 = vpop.f32.mrb[9].mxu1 }
0x1452   : > { %1873 = vtanh.f32 %v1282_v46  ;;  %v1513_v49 = vmul.f32 -1.442695, %v1282_v46 }
0x1454   : > { %1875 = vpow2.f32 %v1513_v49 }
0x145c   : > { %v1874_v48 = vpop.eup %1873 }
0x145d   : > { %1292 = vrot.lane.b32.xlu0 %v1874_v48, %s1983_s28 }
0x145e   : > { %v1876_v50 = vpop.eup %1875 }
0x145f   : > { %v1286_v51 = vadd.f32 1.0, %v1876_v50 }
0x1461   : > { %1877 = vrcp.f32 %v1286_v51 }
0x146b   : > { %v1878_v52 = vpop.eup %1877 }
0x146c   : > { %v1290_v55 = vmul.f32 %v1878_v52, %v1195_v9 }
0x14cf   : > { %v1293_v53 = vpop.permute.xlu0 %1292 }
0x14d0   : > { %v1295_v54 = vmul.f32 %v1878_v52, %v1293_v53 }
0x14d2   : > { %1297 = vrot.lane.b32.xlu1 %v1295_v54, %s1983_s28 }
0x1544   : > { %v1298_v56 = vpop.permute.xlu1 %1297 }
0x1545   : > { %v1300_v24 = vadd.f32 %v1298_v56, %v1290_v55 }
0x1547   : > { %1879 = vtanh.f32 %v1300_v24 }
0x1551   : > { %v1880_v8 = vpop.eup %1879 }
0x1552   : > { %1303 = vrot.lane.b32.xlu0 %v1880_v8, %s1983_s28 }
0x15c4   : > { %v1304_v57 = vpop.permute.xlu0 %1303 }
0x15c5   : > { %v1306_v58 = vmul.f32 %v1878_v52, %v1304_v57 }
0x15c7   : > { %1308 = vrot.lane.b32.xlu1 %v1306_v58, %s1984_s12 }
0x1634   : > { %1316 = sbr.rel (%p1514_p7) target bundleno = 5905 (0x1711), region = 56 }
0x1639   : > { %v1309_v59 = vpop.permute.xlu1 %1308 }
0x163a   : > { %1312 = vst.msk [vmem:[#allocation2 + $0x38] sm:$0xff] %vm332_vm1, %v1309_v59  ;;  %1697 = vmatmul.mubr.msk.f32.vlgmr.msra.gmra.mrb[0].mxu0 (!%p1514_p7), %vm332_vm1, %v1309_v59 }
0x170d   : > { %v1396_v5 = vpop.f32.mrb[0].mxu0 }
0x170e   : > { %v1397_v7 = vadd.f32 %v1515_v4, %v1396_v5  ;;  %v1698_v10 = vpop.f32.mrb[1].mxu0 }
0x1710   : > { %1400 = vst [vmem:[#allocation7] sm:$0xff] %v1397_v7 }
0x1711 PF: > { %p1772_p4 = scmp.eq.s32.totalorder %s2043_s25, 1  ;;  %s1988_s14 = smov [#allocation7]  }
0x1712   : > { %s1408_s15 = sshll.u32 %s1988_s14, 4  ;;  %s1409_s15 = int_to_ptr.vmem [resolvable:$true] %s1408_s15 }
0x1713   : > { %s1911_s20 = scalar_lea.vmem %s1409_s15, 128  ;;  %p1918_p12 = scmp.lt.s32.totalorder %s1409_s15, %s1409_s15 }
0x1714   : > { %p1912_p5 = scmp.ne.s32.totalorder %s1409_s15, %s1911_s20  ;;  %p1919_p0 = scmp.lt.s32.totalorder %s1911_s20, %s1911_s20 }
0x1716   : > { %p1913_p6 = pnand %p1912_p5, %p1772_p4  ;;  %p1920_p1 = por %p1919_p0, %p1918_p12 }
0x1718   : > { %p1914_p10 = pneg %p1913_p6 }
0x171a   : > { %p1921_p2 = pnand %p1920_p1, %p1914_p10 }
0x171c   : > { %1924 = shalt.err (!%p1921_p2)
}
0x171d   : > { %s1925_s19 = scalar_lea.hbm %s2351_s6, 128 }
0x171e   : > { %p1926_p11 = scmp.ne.s32.totalorder %s2351_s6, %s1925_s19  ;;  %p1931_p9 = scmp.lt.u32.totalorder %s1925_s19, %s2351_s6 }
0x1720   : > { %p1927_p13 = pnand %p1926_p11, %p1772_p4 }
0x1722   : > { %p1928_p3 = pneg %p1927_p13 }
0x1724   : > { %p1933_p8 = pnand %p1931_p9, %p1928_p3 }
0x1726   : > { %1936 = shalt.err (!%p1933_p8)
}
0x1727   : > { %1764 = dma.vmem_to_hbm [thread:$0]  (%p1772_p4), %s1409_s15, 128, %s2351_s6, [#allocation6]  }
0x1728   : > { %1958 = dma.done.wait (%p1772_p4), [#allocation6], 128  }
0x1729   : > { %1960 = vsyncadd (%p1772_p4), [#allocation6], 4294967168 }
0x172a PF: > { %p17_p7 = scmp.ge.s32.totalorder %s2046_s26, 4   ;;  %s2355_s21 = smov %s1967_s22 }
0x172b   : > { %s2356_s22 = smov %s1971_s23  ;;  %s2357_s23 = smov %s2056_s29 }
0x172c   : > { %s2358_s24 = smov %s2046_s26  ;;  %19 = sbr.rel (!%p17_p7) target bundleno = 4 (0x4), region = 109 }
0x1733   :  { %1421 = vsyncpa [#allocation5], 1 }
0x1734   :  { %1423 = vsyncpa [#allocation5 + $0x1], 1 }
0x1735   :  { %1424 = vsyncpa [#allocation6], 1 }
0x1736   :  { %1426 = vsyncpa [#allocation6 + $0x1], 1 }

</bundles_post_ra>
